<compile_context>
chip_gen: v7x
topology: tpu7x:2x2x1
jax: 0.10.0
libtpu: 0.0.40
codegen_flags: <defaults>
</compile_context>

<pallas_src>
import functools

import jax
import jax.numpy as jnp
from jax import lax
from jax.experimental import pallas as pl
from jax.experimental.pallas import tpu as pltpu

OUT_DIM = 256


def _mlp_kernel(x_ref, w_ref, b_ref, o_ref, *, compute_dtype):
    # x_ref: (C, TS)   -- one batch element's channel-major activation tile
    #                     (kept in its HBM dtype; cast here, under DMA shadow)
    # w_ref: (C, OUT)  -- grid-invariant, VMEM-resident, compute_dtype
    # b_ref: (1, OUT)  -- grid-invariant, f32
    # o_ref: (TS, OUT) -- out_dtype (lane-dense, 256-wide)
    x = x_ref[...].astype(compute_dtype)
    acc = lax.dot_general(
        x, w_ref[...],
        dimension_numbers=(((0,), (0,)), ((), ())),   # contract over C
        preferred_element_type=jnp.float32)           # (TS, OUT), f32 acc
    o_ref[...] = (acc + b_ref[...]).astype(o_ref.dtype)


@functools.partial(jax.jit, static_argnames=("ts", "compute_dtype", "out_dtype"))
def facexformer_mlp(hidden_states, weight, bias, *, ts=1024,
                    compute_dtype=None, out_dtype=None):
    """hidden_states: (B, C, H, W); weight: (OUT_DIM, C); bias: (OUT_DIM,).

    compute_dtype: MXU operand dtype (default: input dtype). bf16 recommended
                   for production on all generations (f32 accumulation kept).
    out_dtype:     output array dtype (default: input dtype, matching the
                   PyTorch module; bf16 nearly halves HBM traffic for small C).
    """
    B, C, H, W = hidden_states.shape
    S = H * W
    assert weight.shape == (OUT_DIM, C)
    assert bias.shape == (OUT_DIM,)

    if compute_dtype is None:
        compute_dtype = hidden_states.dtype
    if out_dtype is None:
        out_dtype = hidden_states.dtype

    # Free reshape: stay channel-major, ORIGINAL dtype (no host-side astype
    # pass over the activations), no transpose / no pad in XLA.
    x3 = hidden_states.reshape(B, C, S)
    w_t = weight.T.astype(compute_dtype)               # (C, OUT_DIM), tiny
    b2d = bias.reshape(1, OUT_DIM).astype(jnp.float32)  # f32 end-to-end

    # Spatial tile: large for HBM-bandwidth efficiency, never larger than S.
    ts = min(ts, S)
    assert ts == S or ts % 128 == 0, "ts must be a multiple of 128 (or == H*W)"

    # v7x megacore: keep the total number of parallel grid steps even so both
    # TensorCores stay busy; a single halving (ts stays >=512, mult of 128)
    # is taken only if it fixes parity. No-op on single-TC v5e/v6e.
    if ts != S and ts >= 1024:
        if (B * pl.cdiv(S, ts)) % 2 == 1 and (B * pl.cdiv(S, ts // 2)) % 2 == 0:
            ts //= 2

    grid = (B, pl.cdiv(S, ts))

    in_item = jnp.dtype(x3.dtype).itemsize
    cd_item = jnp.dtype(compute_dtype).itemsize
    out_item = jnp.dtype(out_dtype).itemsize

    # Double-buffered in/out blocks + resident weight/bias + headroom,
    # capped at 75% of this generation's physical VMEM.
    blk_bytes = (2 * (C * ts * in_item + ts * OUT_DIM * out_item)
                 + C * OUT_DIM * cd_item + OUT_DIM * 4)
    try:
        vmem_cap = int(pltpu.get_tpu_info().vmem_capacity_bytes)
    except Exception:  # not on a TPU / interpret mode
        vmem_cap = 64 << 20
    vmem_limit = int(min(max(2 * blk_bytes + (2 << 20), 16 << 20),
                         int(0.75 * vmem_cap)))

    cost = pl.CostEstimate(
        flops=2 * B * S * C * OUT_DIM,
        transcendentals=0,
        bytes_accessed=(B * S * C * in_item + B * S * OUT_DIM * out_item
                        + C * OUT_DIM * cd_item + OUT_DIM * 4))

    kernel = functools.partial(_mlp_kernel, compute_dtype=compute_dtype)

    out = pl.pallas_call(
        kernel,
        out_shape=jax.ShapeDtypeStruct((B, S, OUT_DIM), out_dtype),
        grid_spec=pltpu.PrefetchScalarGridSpec(
            num_scalar_prefetch=0,
            grid=grid,
            in_specs=[
                # (B, C, S): squeeze B, full C, spatial tile -> kernel ref (C, ts)
                pl.BlockSpec((None, C, ts), lambda b, j: (b, 0, j)),
                # weight / bias: grid-invariant blocks (DMA'd once, stay resident)
                pl.BlockSpec((C, OUT_DIM), lambda b, j: (0, 0)),
                pl.BlockSpec((1, OUT_DIM), lambda b, j: (0, 0)),
            ],
            out_specs=pl.BlockSpec((None, ts, OUT_DIM), lambda b, j: (b, j, 0)),
        ),
        compiler_params=pltpu.CompilerParams(
            dimension_semantics=("parallel", "parallel"),
            vmem_limit_bytes=vmem_limit),
        cost_estimate=cost,
    )(x3, w_t, b2d)

    return out                                      # (B, H*W, OUT_DIM)


def _reference(hidden_states, weight, bias):
    B, C, H, W = hidden_states.shape
    x = hidden_states.reshape(B, C, H * W).transpose(0, 2, 1)
    return jnp.einsum("bsc,oc->bso", x, weight) + bias


if __name__ == "__main__":
    key = jax.random.PRNGKey(0)
    k_x, k_w, k_b = jax.random.split(key, 3)

    B, C, H, W = 2, 4, 16, 16           # input_dim = C = 4
    x = jax.random.normal(k_x, (B, C, H, W), dtype=jnp.float32)
    # nn.Linear(input_dim, 256): weight (256, input_dim), bias (256,)
    weight = jax.random.normal(k_w, (OUT_DIM, C), dtype=jnp.float32) * 0.05
    bias = jax.random.normal(k_b, (OUT_DIM,), dtype=jnp.float32) * 0.05

    ref = _reference(x, weight, bias)

    # f32 path (matches the PyTorch module's dtype semantics).
    out = jax.block_until_ready(facexformer_mlp(x, weight, bias))
    assert out.shape == (B, H * W, OUT_DIM), out.shape
    assert out.dtype == jnp.float32
    assert jnp.allclose(out, ref, atol=1e-4, rtol=1e-4), "f32 mismatch vs reference"

    # Production path: bf16 MXU operands + bf16 output (~halves HBM traffic on
    # v5e/v6e/v7x), f32 accumulation + f32 bias, NO host-side cast pass.
    out_bf16 = jax.block_until_ready(
        facexformer_mlp(x, weight, bias,
                        compute_dtype=jnp.bfloat16, out_dtype=jnp.bfloat16))
    assert out_bf16.shape == (B, H * W, OUT_DIM), out_bf16.shape
    assert out_bf16.dtype == jnp.bfloat16
    assert jnp.allclose(out_bf16.astype(jnp.float32), ref, atol=5e-2, rtol=5e-2), \
        "bf16 mismatch vs reference"

    print("KERNEL_OK")
</pallas_src>

<mosaic_0001>
module attributes {stable_mosaic.version = 11 : i64} {
  func.func @_mlp_kernel(%arg0: i32, %arg1: i32, %arg2: memref<1x4x256xf32, #tpu.memory_space<vmem>>, %arg3: memref<4x256xf32, #tpu.memory_space<vmem>>, %arg4: memref<1x256xf32, #tpu.memory_space<vmem>>, %arg5: memref<1x256x256xf32, #tpu.memory_space<vmem>>) attributes {dimension_semantics = [#tpu.dimension_semantics<parallel>, #tpu.dimension_semantics<parallel>], iteration_bounds = array<i64: 2, 1>, scalar_prefetch = 0 : i64, scratch_operands = 0 : i64, tpu.core_type = #tpu.core_type<tc>, window_params = [{transform_indices = @transform_0, window_bounds = array<i64: 1, 4, 256>}, {pipeline_mode = #tpu.pipeline_mode<synchronous>, transform_indices = @transform_1, window_bounds = array<i64: 4, 256>}, {pipeline_mode = #tpu.pipeline_mode<synchronous>, transform_indices = @transform_2, window_bounds = array<i64: 1, 256>}, {transform_indices = @transform_3, window_bounds = array<i64: 1, 256, 256>}]} {
    %c0 = arith.constant 0 : index
    %c0_0 = arith.constant 0 : index
    %c0_1 = arith.constant 0 : index
    %0 = vector.load %arg2[%c0, %c0_0, %c0_1] : memref<1x4x256xf32, #tpu.memory_space<vmem>>, vector<1x4x256xf32>
    %1 = vector.shape_cast %0 : vector<1x4x256xf32> to vector<4x256xf32>
    %c0_2 = arith.constant 0 : index
    %c0_3 = arith.constant 0 : index
    %2 = vector.load %arg3[%c0_2, %c0_3] : memref<4x256xf32, #tpu.memory_space<vmem>>, vector<4x256xf32>
    %cst = arith.constant dense<0.000000e+00> : vector<256x256xf32>
    %3 = tpu.matmul %1, %2, %cst {dimension_numbers = #tpu.dot_dimension_numbers<[0], [0], [1], [1], [0, 1, 1, 1], [], []>} : vector<4x256xf32>, vector<4x256xf32>, vector<256x256xf32> -> vector<256x256xf32>
    %c0_4 = arith.constant 0 : index
    %c0_5 = arith.constant 0 : index
    %4 = vector.load %arg4[%c0_4, %c0_5] : memref<1x256xf32, #tpu.memory_space<vmem>>, vector<1x256xf32>
    %5 = vector.broadcast %4 : vector<1x256xf32> to vector<256x256xf32>
    %6 = arith.addf %3, %5 : vector<256x256xf32>
    %c0_6 = arith.constant 0 : index
    %c0_7 = arith.constant 0 : index
    %c0_8 = arith.constant 0 : index
    %7 = vector.load %arg5[%c0_6, %c0_7, %c0_8] : memref<1x256x256xf32, #tpu.memory_space<vmem>>, vector<1x256x256xf32>
    %8 = vector.shape_cast %7 : vector<1x256x256xf32> to vector<256x256xf32>
    %9 = vector.shape_cast %6 : vector<256x256xf32> to vector<1x256x256xf32>
    tpu.vector_store %arg5[%c0_6, %c0_7, %c0_8], %9 {strides = array<i32>} : memref<1x256x256xf32, #tpu.memory_space<vmem>>, vector<1x256x256xf32>,
    return
  }
  func.func @transform_0(%arg0: i32, %arg1: i32) -> (i32, i32, i32) {
    %c0_i32 = arith.constant 0 : i32
    %c0_i32_0 = arith.constant 0 : i32
    return %arg0, %c0_i32, %arg1 : i32, i32, i32
  }
  func.func @transform_1(%arg0: i32, %arg1: i32) -> (i32, i32) {
    %c0_i32 = arith.constant 0 : i32
    %c0_i32_0 = arith.constant 0 : i32
    %c0_i32_1 = arith.constant 0 : i32
    return %c0_i32, %c0_i32_0 : i32, i32
  }
  func.func @transform_2(%arg0: i32, %arg1: i32) -> (i32, i32) {
    %c0_i32 = arith.constant 0 : i32
    %c0_i32_0 = arith.constant 0 : i32
    %c0_i32_1 = arith.constant 0 : i32
    return %c0_i32, %c0_i32_0 : i32, i32
  }
  func.func @transform_3(%arg0: i32, %arg1: i32) -> (i32, i32, i32) {
    %c0_i32 = arith.constant 0 : i32
    %c0_i32_0 = arith.constant 0 : i32
    return %arg0, %arg1, %c0_i32 : i32, i32, i32
  }
}

</mosaic_0001>

<bundles_post_ra>
// kernel: facexformer_mlp.1
= control target key start
LH: loop header
LB: loop body
LE: loop exit
PB: predicated region body
PF: predicated region fallthrough
CT: control target
= control target key end

     0   :  { %8 = vsyncpa [#allocation3], 0  ;;  %s1341_s0 = inlined_call_operand.vmem [shape: f32[2,4,256], index: 0, kind: input, shape index: {}]   ;;  %s1342_s1 = inlined_call_operand.vmem [shape: f32[4,256], index: 1, kind: input, shape index: {}]   ;;  %s1343_s2 = inlined_call_operand.vmem [shape: f32[1,256], index: 2, kind: input, shape index: {}]   ;;  %s1344_s3 = inlined_call_operand.hbm [shape: f32[2,256,256], index: 3, kind: output, shape index: {}]  }
   0x1   :  { %10 = vsyncpa [#allocation3 + $0x1], 0  ;;  %s1017_s12 = smov 0   ;;  %s1019_s13 = smov 0  }
   0x2   :  { %s1021_s14 = smov 0   ;;  %s1023_s15 = smov 0  }
   0x3   :  { %s1025_s16 = smov 0   ;;  %s1027_s17 = smov 0  }
   0x4 LB: > { %s802_s18 = sadd.s32 4294967295, %s991_s17   ;;  %s803_s19 = sadd.s32 4294967294, %s991_s17   ;;  %s991_s17 = sphi %s1027_s17, %s16_s17   ;;  %s987_s16 = sphi %s1025_s16, %s1351_s16   ;;  %s983_s15 = sphi %s1023_s15, %s1350_s15   ;;  %s979_s14 = sphi %s1021_s14, %s1349_s14   ;;  %s975_s13 = sphi %s1019_s13, %s1348_s13   ;;  %s971_s12 = sphi %s1017_s12, %s1347_s12  }
   0x5   : > { %s28_s20 = sadd.s32 1, %s987_s16  ;;  %s107_s21 = sadd.s32 1, %s979_s14 }
   0x6   : > { %p30_p0 = scmp.ge.s32.totalorder %s28_s20, 2  ;;  %p117_p1 = scmp.ne.s32.totalorder %s979_s14, %s975_s13 }
   0x7   : > { %p118_p2 = scmp.eq.s32.totalorder %s802_s18, 1  ;;  %p123_p3 = scmp.ne.s32.totalorder %s975_s13, %s971_s12 }
   0x8   : > { %s1353_s20 = smov (%p30_p0, %s28_s20), 0  ;;  %p124_p5 = scmp.eq.s32.totalorder %s803_s19, 1 }
   0x9   : > { %p1057_p4 = por %p118_p2, %p117_p1  ;;  %s102_s23 = ssub.s32 %s987_s16, %s1353_s20 }
   0xa   : > { %p806_p6 = scmp.ge.s32.totalorder %s991_s17, 1  ;;  %p105_p7 = scmp.eq.s32.totalorder %s102_s23, 0 }
   0xb   : > { %p1064_p8 = por %p124_p5, %p123_p3  ;;  %p161_p9 = scmp.lt.s32.totalorder %s991_s17, 3 }
   0xc   : > { %s1070_s25 = scalar_select %p105_p7, %s979_s14, %s107_s21  }
   0xd   : > { %p162_p10 = pnand %p806_p6, %p161_p9 }
   0xe   : > { %p190_p11 = scmp.lt.s32.totalorder (!%p162_p10), %s983_s15, 1  ;;  %v201_v0 = vld [vmem:[%s1342_s1] sm:$0xff] (!%p162_p10)  ;;  %vm380_vm0 = vcmask (!%p162_p10), 1043456   ;;  %v993_v2 = vmov (!%p162_p10), 0.0   ;;  %vm283_vm1 = vcmask (!%p162_p10), 31744   ;;  %v204_v37 = vlaneseq (!%p162_p10)  ;;  %s186_s6 = sand.u32 (!%p162_p10), 1, %s975_s13  }
   0xf   : > { %165 = sbr.rel (%p162_p10) target bundleno = 510 (0x1fe), region = 32  ;;  %v282_v1 = vcombine.high (!%p162_p10), %v201_v0, %v201_v0  ;;  %449 = vmatprep.mubr.f32.mxu0 (!%p162_p10), %v993_v2  ;;  %545 = vmatprep.mubr.f32.mxu1 (!%p162_p10), %v993_v2  ;;  %v202_v40 = vld [vmem:[%s1343_s2] sm:$0x3] (!%p162_p10)  ;;  %s807_s9 = sshll.u32 (!%p162_p10), %s186_s6, 9 }
  0x10   : > { %v205_v38 = vshrl.u32 (!%p162_p10), %v204_v37, 7  ;;  %s1156_s10 = scalar_lea.vmem (!%p162_p10), [#allocation2], %s807_s9  ;;  %s850_s11 = sshll.u32 (!%p162_p10), %s983_s15, 13 }
  0x11   : > { %810 = vmatprep.subr.msk.mxu0 (!%p162_p10), %vm380_vm0, %v282_v1  ;;  %851 = vmatprep.subr.msk.mxu1 (!%p162_p10), %vm380_vm0, %v282_v1  ;;  %s723_s18 = sshll.u32 (!%p162_p10), %s1156_s10, 4  ;;  %s1286_s23 = scalar_lea.hbm (!%p162_p10), %s1344_s3, %s850_s11  ;;  %s1288_s18 = int_to_ptr.vmem [resolvable:$true] %s723_s18 }
  0x12   : > { %811 = vmatpush1.msk.msra.mxu0 (!%p162_p10), %vm380_vm0, %v201_v0  ;;  %852 = vmatpush1.msk.msra.mxu1 (!%p162_p10), %vm380_vm0, %v201_v0  ;;  %v206_v39 = vsub.s32 (!%p162_p10), 0, %v205_v38  ;;  %v210_v41 = vsub.s32 (!%p162_p10), 1, %v205_v38  ;;  %s913_s26 = scalar_lea.vmem (!%p162_p10), %s1288_s18, 8192  ;;  %s994_s27 = smov (!%p162_p10), [#allocation2]  }
  0x13   : > { %p914_p12 = scmp.ne.s32.totalorder (!%p162_p10), %s1288_s18, %s913_s26 }
  0x14   : > { %v1150_v42 = vrot.slane (!%p162_p10), %v202_v40, %v206_v39  ;;  %v1152_v43 = vrot.slane (!%p162_p10), %v202_v40, %v210_v41 }
  0x15   : > { %p915_p13 = pnand (!%p162_p10), %p914_p12, %p1057_p4 }
  0x16   : > { %s191_s28 = scalar_select %p190_p11, %s983_s15, 1 }
  0x17   : > { %s1295_s15 = scalar_lea.sflag [#allocation3], %s186_s6  ;;  %p916_p0 = pneg %p915_p13 }
  0x18   : > { %s849_s29 = sshll.u32 %s191_s28, 3  ;;  %s917_s28 = sshll.u32 %s994_s27, 4  ;;  %s918_s28 = int_to_ptr.vmem [resolvable:$false] %s917_s28 }
  0x19   : > { %s197_s5 = scalar_lea.vmem %s1341_s0, %s849_s29  ;;  %s919_s29 = scalar_lea.vmem %s918_s28, 16384 }
  0x1a   : > { %v200_v3 = vld [vmem:[%s197_s5] sm:$0xff]  ;;  %p920_p1 = scmp.lt.s32.totalorder %s1288_s18, %s918_s28  ;;  %p921_p2 = scmp.lt.s32.totalorder %s919_s29, %s913_s26 }
  0x1b   : > { %217 = vxpose.xlu0.b32.start.end [1/1] (short) %v200_v3, 128  ;;  %v215_v4 = vcombine.high %v200_v3, %v200_v3 }
  0x1c   : > { %p922_p3 = por %p921_p2, %p920_p1 }
  0x1e   : > { %p923_p5 = pnand %p922_p3, %p916_p0 }
  0x58   : > { %249 = vxpose.xlu0.b32.start.end [1/1] (short) %v215_v4, 128 }
  0x9b   : > { %v233_v5 = vpop.trf.xlu0 }
  0x9c   : > { %812 = vmatmul.mubr.msk.f32.vlgmr.msra.gmra.mrb[0].mxu0 %vm283_vm1, %v233_v5 }
  0x9d   : > { %455 = vmatprep.mubr.f32.mxu0 %v993_v2 }
  0x9f   : > { %v234_v6 = vpop.trf.xlu0 }
  0xa0   : > { %813 = vmatmul.mubr.msk.f32.gmra.mrb[2].mxu0 %vm283_vm1, %v234_v6 }
  0xa1   : > { %461 = vmatprep.mubr.f32.mxu0 %v993_v2 }
  0xa3   : > { %v235_v7 = vpop.trf.xlu0 }
  0xa4   : > { %814 = vmatmul.mubr.msk.f32.gmra.mrb[4].mxu0 %vm283_vm1, %v235_v7 }
  0xa5   : > { %467 = vmatprep.mubr.f32.mxu0 %v993_v2 }
  0xa7   : > { %v236_v8 = vpop.trf.xlu0 }
  0xa8   : > { %815 = vmatmul.mubr.msk.f32.gmra.mrb[6].mxu0 %vm283_vm1, %v236_v8 }
  0xa9   : > { %473 = vmatprep.mubr.f32.mxu0 %v993_v2 }
  0xab   : > { %v237_v9 = vpop.trf.xlu0 }
  0xac   : > { %816 = vmatmul.mubr.msk.f32.gmra.mrb[8].mxu0 %vm283_vm1, %v237_v9 }
  0xad   : > { %479 = vmatprep.mubr.f32.mxu0 %v993_v2 }
  0xaf   : > { %v238_v10 = vpop.trf.xlu0 }
  0xb0   : > { %817 = vmatmul.mubr.msk.f32.gmra.mrb[10].mxu0 %vm283_vm1, %v238_v10 }
  0xb1   : > { %485 = vmatprep.mubr.f32.mxu0 %v993_v2 }
  0xb3   : > { %v239_v11 = vpop.trf.xlu0 }
  0xb4   : > { %818 = vmatmul.mubr.msk.f32.gmra.mrb[12].mxu0 %vm283_vm1, %v239_v11 }
  0xb5   : > { %491 = vmatprep.mubr.f32.mxu0 %v993_v2 }
  0xb7   : > { %v240_v12 = vpop.trf.xlu0 }
  0xb8   : > { %819 = vmatmul.mubr.msk.f32.gmra.mrb[14].mxu0 %vm283_vm1, %v240_v12 }
  0xb9   : > { %497 = vmatprep.mubr.f32.mxu0 %v993_v2 }
  0xbb   : > { %v241_v13 = vpop.trf.xlu0 }
  0xbc   : > { %820 = vmatmul.mubr.msk.f32.gmra.mrb[16].mxu0 %vm283_vm1, %v241_v13 }
  0xbd   : > { %503 = vmatprep.mubr.f32.mxu0 %v993_v2 }
  0xbf   : > { %v242_v14 = vpop.trf.xlu0 }
  0xc0   : > { %821 = vmatmul.mubr.msk.f32.gmra.mrb[18].mxu0 %vm283_vm1, %v242_v14 }
  0xc1   : > { %509 = vmatprep.mubr.f32.mxu0 %v993_v2 }
  0xc3   : > { %v243_v15 = vpop.trf.xlu0 }
  0xc4   : > { %822 = vmatmul.mubr.msk.f32.gmra.mrb[20].mxu0 %vm283_vm1, %v243_v15 }
  0xc5   : > { %515 = vmatprep.mubr.f32.mxu0 %v993_v2 }
  0xc7   : > { %v244_v16 = vpop.trf.xlu0 }
  0xc8   : > { %823 = vmatmul.mubr.msk.f32.gmra.mrb[22].mxu0 %vm283_vm1, %v244_v16 }
  0xc9   : > { %521 = vmatprep.mubr.f32.mxu0 %v993_v2 }
  0xcb   : > { %v245_v17 = vpop.trf.xlu0 }
  0xcc   : > { %824 = vmatmul.mubr.msk.f32.gmra.mrb[24].mxu0 %vm283_vm1, %v245_v17 }
  0xcd   : > { %527 = vmatprep.mubr.f32.mxu0 %v993_v2 }
  0xcf   : > { %v246_v18 = vpop.trf.xlu0 }
  0xd0   : > { %825 = vmatmul.mubr.msk.f32.gmra.mrb[26].mxu0 %vm283_vm1, %v246_v18 }
  0xd1   : > { %533 = vmatprep.mubr.f32.mxu0 %v993_v2 }
  0xd3   : > { %v247_v19 = vpop.trf.xlu0 }
  0xd4   : > { %826 = vmatmul.mubr.msk.f32.gmra.mrb[28].mxu0 %vm283_vm1, %v247_v19 }
  0xd5   : > { %539 = vmatprep.mubr.f32.mxu0 %v993_v2 }
  0xd7   : > { %v248_v20 = vpop.trf.xlu0 }
  0xd8   : > { %827 = vmatmul.mubr.msk.f32.gmra.mrb[30].mxu0 %vm283_vm1, %v248_v20 }
  0xdb   : > { %v265_v21 = vpop.trf.xlu0 }
  0xdc   : > { %828 = vmatmul.mubr.msk.f32.vlgmr.msra.gmra.mrb[0].mxu1 %vm283_vm1, %v265_v21 }
  0xdd   : > { %551 = vmatprep.mubr.f32.mxu1 %v993_v2 }
  0xdf   : > { %v266_v22 = vpop.trf.xlu0 }
  0xe0   : > { %829 = vmatmul.mubr.msk.f32.gmra.mrb[2].mxu1 %vm283_vm1, %v266_v22 }
  0xe1   : > { %557 = vmatprep.mubr.f32.mxu1 %v993_v2 }
  0xe3   : > { %v267_v23 = vpop.trf.xlu0 }
  0xe4   : > { %830 = vmatmul.mubr.msk.f32.gmra.mrb[4].mxu1 %vm283_vm1, %v267_v23 }
  0xe5   : > { %563 = vmatprep.mubr.f32.mxu1 %v993_v2 }
  0xe7   : > { %v268_v24 = vpop.trf.xlu0 }
  0xe8   : > { %831 = vmatmul.mubr.msk.f32.gmra.mrb[6].mxu1 %vm283_vm1, %v268_v24 }
  0xe9   : > { %569 = vmatprep.mubr.f32.mxu1 %v993_v2 }
  0xeb   : > { %v269_v25 = vpop.trf.xlu0 }
  0xec   : > { %832 = vmatmul.mubr.msk.f32.gmra.mrb[8].mxu1 %vm283_vm1, %v269_v25 }
  0xed   : > { %575 = vmatprep.mubr.f32.mxu1 %v993_v2 }
  0xef   : > { %v270_v26 = vpop.trf.xlu0 }
  0xf0   : > { %833 = vmatmul.mubr.msk.f32.gmra.mrb[10].mxu1 %vm283_vm1, %v270_v26 }
  0xf1   : > { %581 = vmatprep.mubr.f32.mxu1 %v993_v2 }
  0xf3   : > { %v271_v27 = vpop.trf.xlu0 }
  0xf4   : > { %834 = vmatmul.mubr.msk.f32.gmra.mrb[12].mxu1 %vm283_vm1, %v271_v27 }
  0xf5   : > { %587 = vmatprep.mubr.f32.mxu1 %v993_v2 }
  0xf7   : > { %v272_v28 = vpop.trf.xlu0 }
  0xf8   : > { %835 = vmatmul.mubr.msk.f32.gmra.mrb[14].mxu1 %vm283_vm1, %v272_v28 }
  0xf9   : > { %593 = vmatprep.mubr.f32.mxu1 %v993_v2 }
  0xfb   : > { %v273_v29 = vpop.trf.xlu0 }
  0xfc   : > { %836 = vmatmul.mubr.msk.f32.gmra.mrb[16].mxu1 %vm283_vm1, %v273_v29 }
  0xfd   : > { %599 = vmatprep.mubr.f32.mxu1 %v993_v2 }
  0xff   : > { %v274_v30 = vpop.trf.xlu0 }
 0x100   : > { %837 = vmatmul.mubr.msk.f32.gmra.mrb[18].mxu1 %vm283_vm1, %v274_v30 }
 0x101   : > { %605 = vmatprep.mubr.f32.mxu1 %v993_v2 }
 0x103   : > { %v275_v31 = vpop.trf.xlu0 }
 0x104   : > { %838 = vmatmul.mubr.msk.f32.gmra.mrb[20].mxu1 %vm283_vm1, %v275_v31 }
 0x105   : > { %611 = vmatprep.mubr.f32.mxu1 %v993_v2 }
 0x107   : > { %v276_v32 = vpop.trf.xlu0 }
 0x108   : > { %839 = vmatmul.mubr.msk.f32.gmra.mrb[22].mxu1 %vm283_vm1, %v276_v32 }
 0x109   : > { %617 = vmatprep.mubr.f32.mxu1 %v993_v2 }
 0x10b   : > { %v277_v33 = vpop.trf.xlu0 }
 0x10c   : > { %840 = vmatmul.mubr.msk.f32.gmra.mrb[24].mxu1 %vm283_vm1, %v277_v33 }
 0x10d   : > { %623 = vmatprep.mubr.f32.mxu1 %v993_v2 }
 0x10f   : > { %v278_v34 = vpop.trf.xlu0 }
 0x110   : > { %841 = vmatmul.mubr.msk.f32.gmra.mrb[26].mxu1 %vm283_vm1, %v278_v34 }
 0x111   : > { %629 = vmatprep.mubr.f32.mxu1 %v993_v2 }
 0x113   : > { %v279_v35 = vpop.trf.xlu0 }
 0x114   : > { %842 = vmatmul.mubr.msk.f32.gmra.mrb[28].mxu1 %vm283_vm1, %v279_v35 }
 0x115   : > { %635 = vmatprep.mubr.f32.mxu1 %v993_v2 }
 0x117   : > { %v280_v36 = vpop.trf.xlu0 }
 0x118   : > { %843 = vmatmul.mubr.msk.f32.gmra.mrb[30].mxu1 %vm283_vm1, %v280_v36 }
 0x16f   : > { %v451_v44 = vpop.f32.mrb[0].mxu0 }
 0x170   : > { %v452_v45 = vadd.f32 %v451_v44, %v1150_v42  ;;  %v453_v46 = vpop.f32.mrb[1].mxu0 }
 0x171   : > { %v454_v47 = vadd.f32 %v453_v46, %v1152_v43 }
 0x172   : > { %642 = vst [vmem:[%s1156_s10] sm:$0xff] %v452_v45 }
 0x173   : > { %643 = vst [vmem:[%s1156_s10 + $0x8] sm:$0xff] %v454_v47  ;;  %v457_v48 = vpop.f32.mrb[2].mxu0 }
 0x174   : > { %v458_v49 = vadd.f32 %v457_v48, %v1150_v42  ;;  %v459_v50 = vpop.f32.mrb[3].mxu0 }
 0x175   : > { %v460_v51 = vadd.f32 %v459_v50, %v1152_v43 }
 0x176   : > { %644 = vst [vmem:[%s1156_s10 + $0x10] sm:$0xff] %v458_v49 }
 0x177   : > { %645 = vst [vmem:[%s1156_s10 + $0x18] sm:$0xff] %v460_v51  ;;  %v463_v52 = vpop.f32.mrb[4].mxu0 }
 0x178   : > { %v464_v53 = vadd.f32 %v463_v52, %v1150_v42  ;;  %v465_v54 = vpop.f32.mrb[5].mxu0 }
 0x179   : > { %v466_v55 = vadd.f32 %v465_v54, %v1152_v43 }
 0x17a   : > { %646 = vst [vmem:[%s1156_s10 + $0x20] sm:$0xff] %v464_v53 }
 0x17b   : > { %647 = vst [vmem:[%s1156_s10 + $0x28] sm:$0xff] %v466_v55  ;;  %v469_v56 = vpop.f32.mrb[6].mxu0 }
 0x17c   : > { %v470_v57 = vadd.f32 %v469_v56, %v1150_v42  ;;  %v471_v58 = vpop.f32.mrb[7].mxu0 }
 0x17d   : > { %v472_v59 = vadd.f32 %v471_v58, %v1152_v43 }
 0x17e   : > { %648 = vst [vmem:[%s1156_s10 + $0x30] sm:$0xff] %v470_v57 }
 0x17f   : > { %649 = vst [vmem:[%s1156_s10 + $0x38] sm:$0xff] %v472_v59  ;;  %v475_v60 = vpop.f32.mrb[8].mxu0 }
 0x180   : > { %v476_v61 = vadd.f32 %v475_v60, %v1150_v42  ;;  %v477_v62 = vpop.f32.mrb[9].mxu0 }
 0x181   : > { %v478_v63 = vadd.f32 %v477_v62, %v1152_v43 }
 0x182   : > { %650 = vst [vmem:[%s1156_s10 + $0x40] sm:$0xff] %v476_v61 }
 0x183   : > { %651 = vst [vmem:[%s1156_s10 + $0x48] sm:$0xff] %v478_v63  ;;  %v481_v0 = vpop.f32.mrb[10].mxu0 }
 0x184   : > { %v482_v1 = vadd.f32 %v481_v0, %v1150_v42  ;;  %v483_v2 = vpop.f32.mrb[11].mxu0 }
 0x185   : > { %v484_v3 = vadd.f32 %v483_v2, %v1152_v43 }
 0x186   : > { %652 = vst [vmem:[%s1156_s10 + $0x50] sm:$0xff] %v482_v1 }
 0x187   : > { %653 = vst [vmem:[%s1156_s10 + $0x58] sm:$0xff] %v484_v3  ;;  %v487_v4 = vpop.f32.mrb[12].mxu0 }
 0x188   : > { %v488_v5 = vadd.f32 %v487_v4, %v1150_v42  ;;  %v489_v6 = vpop.f32.mrb[13].mxu0 }
 0x189   : > { %v490_v7 = vadd.f32 %v489_v6, %v1152_v43 }
 0x18a   : > { %654 = vst [vmem:[%s1156_s10 + $0x60] sm:$0xff] %v488_v5 }
 0x18b   : > { %655 = vst [vmem:[%s1156_s10 + $0x68] sm:$0xff] %v490_v7  ;;  %v493_v8 = vpop.f32.mrb[14].mxu0 }
 0x18c   : > { %v494_v9 = vadd.f32 %v493_v8, %v1150_v42  ;;  %v495_v10 = vpop.f32.mrb[15].mxu0 }
 0x18d   : > { %v496_v11 = vadd.f32 %v495_v10, %v1152_v43 }
 0x18e   : > { %656 = vst [vmem:[%s1156_s10 + $0x70] sm:$0xff] %v494_v9 }
 0x18f   : > { %657 = vst [vmem:[%s1156_s10 + $0x78] sm:$0xff] %v496_v11  ;;  %v499_v12 = vpop.f32.mrb[16].mxu0 }
 0x190   : > { %v500_v13 = vadd.f32 %v499_v12, %v1150_v42  ;;  %v501_v14 = vpop.f32.mrb[17].mxu0 }
 0x191   : > { %v502_v15 = vadd.f32 %v501_v14, %v1152_v43 }
 0x192   : > { %658 = vst [vmem:[%s1156_s10 + $0x80] sm:$0xff] %v500_v13 }
 0x193   : > { %659 = vst [vmem:[%s1156_s10 + $0x88] sm:$0xff] %v502_v15  ;;  %v505_v16 = vpop.f32.mrb[18].mxu0 }
 0x194   : > { %v506_v17 = vadd.f32 %v505_v16, %v1150_v42  ;;  %v507_v18 = vpop.f32.mrb[19].mxu0 }
 0x195   : > { %v508_v19 = vadd.f32 %v507_v18, %v1152_v43 }
 0x196   : > { %660 = vst [vmem:[%s1156_s10 + $0x90] sm:$0xff] %v506_v17 }
 0x197   : > { %661 = vst [vmem:[%s1156_s10 + $0x98] sm:$0xff] %v508_v19  ;;  %v511_v20 = vpop.f32.mrb[20].mxu0 }
 0x198   : > { %v512_v21 = vadd.f32 %v511_v20, %v1150_v42  ;;  %v513_v22 = vpop.f32.mrb[21].mxu0 }
 0x199   : > { %v514_v23 = vadd.f32 %v513_v22, %v1152_v43 }
 0x19a   : > { %662 = vst [vmem:[%s1156_s10 + $0xa0] sm:$0xff] %v512_v21 }
 0x19b   : > { %663 = vst [vmem:[%s1156_s10 + $0xa8] sm:$0xff] %v514_v23  ;;  %v517_v24 = vpop.f32.mrb[22].mxu0 }
 0x19c   : > { %v518_v25 = vadd.f32 %v517_v24, %v1150_v42  ;;  %v519_v26 = vpop.f32.mrb[23].mxu0 }
 0x19d   : > { %v520_v27 = vadd.f32 %v519_v26, %v1152_v43 }
 0x19e   : > { %664 = vst [vmem:[%s1156_s10 + $0xb0] sm:$0xff] %v518_v25 }
 0x19f   : > { %665 = vst [vmem:[%s1156_s10 + $0xb8] sm:$0xff] %v520_v27  ;;  %v523_v28 = vpop.f32.mrb[24].mxu0 }
 0x1a0   : > { %v524_v29 = vadd.f32 %v523_v28, %v1150_v42  ;;  %v525_v30 = vpop.f32.mrb[25].mxu0 }
 0x1a1   : > { %v526_v31 = vadd.f32 %v525_v30, %v1152_v43 }
 0x1a2   : > { %666 = vst [vmem:[%s1156_s10 + $0xc0] sm:$0xff] %v524_v29 }
 0x1a3   : > { %667 = vst [vmem:[%s1156_s10 + $0xc8] sm:$0xff] %v526_v31  ;;  %v529_v32 = vpop.f32.mrb[26].mxu0 }
 0x1a4   : > { %v530_v33 = vadd.f32 %v529_v32, %v1150_v42  ;;  %v531_v34 = vpop.f32.mrb[27].mxu0 }
 0x1a5   : > { %v532_v35 = vadd.f32 %v531_v34, %v1152_v43 }
 0x1a6   : > { %668 = vst [vmem:[%s1156_s10 + $0xd0] sm:$0xff] %v530_v33 }
 0x1a7   : > { %669 = vst [vmem:[%s1156_s10 + $0xd8] sm:$0xff] %v532_v35  ;;  %v535_v36 = vpop.f32.mrb[28].mxu0 }
 0x1a8   : > { %v536_v37 = vadd.f32 %v535_v36, %v1150_v42  ;;  %v537_v38 = vpop.f32.mrb[29].mxu0 }
 0x1a9   : > { %v538_v39 = vadd.f32 %v537_v38, %v1152_v43 }
 0x1aa   : > { %670 = vst [vmem:[%s1156_s10 + $0xe0] sm:$0xff] %v536_v37 }
 0x1ab   : > { %671 = vst [vmem:[%s1156_s10 + $0xe8] sm:$0xff] %v538_v39  ;;  %v541_v40 = vpop.f32.mrb[30].mxu0 }
 0x1ac   : > { %v542_v41 = vadd.f32 %v541_v40, %v1150_v42  ;;  %v543_v44 = vpop.f32.mrb[31].mxu0 }
 0x1ad   : > { %v544_v45 = vadd.f32 %v543_v44, %v1152_v43 }
 0x1ae   : > { %672 = vst [vmem:[%s1156_s10 + $0xf0] sm:$0xff] %v542_v41 }
 0x1af   : > { %673 = vst [vmem:[%s1156_s10 + $0xf8] sm:$0xff] %v544_v45  ;;  %v547_v46 = vpop.f32.mrb[0].mxu1 }
 0x1b0   : > { %v548_v47 = vadd.f32 %v547_v46, %v1150_v42  ;;  %v549_v48 = vpop.f32.mrb[1].mxu1 }
 0x1b1   : > { %v550_v49 = vadd.f32 %v549_v48, %v1152_v43 }
 0x1b2   : > { %674 = vst [vmem:[%s1156_s10 + $0x100] sm:$0xff] %v548_v47 }
 0x1b3   : > { %675 = vst [vmem:[%s1156_s10 + $0x108] sm:$0xff] %v550_v49  ;;  %v553_v50 = vpop.f32.mrb[2].mxu1 }
 0x1b4   : > { %v554_v51 = vadd.f32 %v553_v50, %v1150_v42  ;;  %v555_v52 = vpop.f32.mrb[3].mxu1 }
 0x1b5   : > { %v556_v53 = vadd.f32 %v555_v52, %v1152_v43 }
 0x1b6   : > { %676 = vst [vmem:[%s1156_s10 + $0x110] sm:$0xff] %v554_v51 }
 0x1b7   : > { %677 = vst [vmem:[%s1156_s10 + $0x118] sm:$0xff] %v556_v53  ;;  %v559_v54 = vpop.f32.mrb[4].mxu1 }
 0x1b8   : > { %v560_v55 = vadd.f32 %v559_v54, %v1150_v42  ;;  %v561_v56 = vpop.f32.mrb[5].mxu1 }
 0x1b9   : > { %v562_v57 = vadd.f32 %v561_v56, %v1152_v43 }
 0x1ba   : > { %678 = vst [vmem:[%s1156_s10 + $0x120] sm:$0xff] %v560_v55 }
 0x1bb   : > { %679 = vst [vmem:[%s1156_s10 + $0x128] sm:$0xff] %v562_v57  ;;  %v565_v58 = vpop.f32.mrb[6].mxu1 }
 0x1bc   : > { %v566_v59 = vadd.f32 %v565_v58, %v1150_v42  ;;  %v567_v60 = vpop.f32.mrb[7].mxu1 }
 0x1bd   : > { %v568_v61 = vadd.f32 %v567_v60, %v1152_v43 }
 0x1be   : > { %680 = vst [vmem:[%s1156_s10 + $0x130] sm:$0xff] %v566_v59 }
 0x1bf   : > { %681 = vst [vmem:[%s1156_s10 + $0x138] sm:$0xff] %v568_v61  ;;  %v571_v62 = vpop.f32.mrb[8].mxu1 }
 0x1c0   : > { %v572_v63 = vadd.f32 %v571_v62, %v1150_v42  ;;  %v573_v0 = vpop.f32.mrb[9].mxu1 }
 0x1c1   : > { %v574_v1 = vadd.f32 %v573_v0, %v1152_v43 }
 0x1c2   : > { %682 = vst [vmem:[%s1156_s10 + $0x140] sm:$0xff] %v572_v63 }
 0x1c3   : > { %683 = vst [vmem:[%s1156_s10 + $0x148] sm:$0xff] %v574_v1  ;;  %v577_v2 = vpop.f32.mrb[10].mxu1 }
 0x1c4   : > { %v578_v3 = vadd.f32 %v577_v2, %v1150_v42  ;;  %v579_v4 = vpop.f32.mrb[11].mxu1 }
 0x1c5   : > { %v580_v5 = vadd.f32 %v579_v4, %v1152_v43 }
 0x1c6   : > { %684 = vst [vmem:[%s1156_s10 + $0x150] sm:$0xff] %v578_v3 }
 0x1c7   : > { %685 = vst [vmem:[%s1156_s10 + $0x158] sm:$0xff] %v580_v5  ;;  %v583_v6 = vpop.f32.mrb[12].mxu1 }
 0x1c8   : > { %v584_v7 = vadd.f32 %v583_v6, %v1150_v42  ;;  %v585_v8 = vpop.f32.mrb[13].mxu1 }
 0x1c9   : > { %v586_v9 = vadd.f32 %v585_v8, %v1152_v43 }
 0x1ca   : > { %686 = vst [vmem:[%s1156_s10 + $0x160] sm:$0xff] %v584_v7 }
 0x1cb   : > { %687 = vst [vmem:[%s1156_s10 + $0x168] sm:$0xff] %v586_v9  ;;  %v589_v10 = vpop.f32.mrb[14].mxu1 }
 0x1cc   : > { %v590_v11 = vadd.f32 %v589_v10, %v1150_v42  ;;  %v591_v12 = vpop.f32.mrb[15].mxu1 }
 0x1cd   : > { %v592_v13 = vadd.f32 %v591_v12, %v1152_v43 }
 0x1ce   : > { %688 = vst [vmem:[%s1156_s10 + $0x170] sm:$0xff] %v590_v11 }
 0x1cf   : > { %689 = vst [vmem:[%s1156_s10 + $0x178] sm:$0xff] %v592_v13  ;;  %v595_v14 = vpop.f32.mrb[16].mxu1 }
 0x1d0   : > { %v596_v15 = vadd.f32 %v595_v14, %v1150_v42  ;;  %v597_v16 = vpop.f32.mrb[17].mxu1 }
 0x1d1   : > { %v598_v17 = vadd.f32 %v597_v16, %v1152_v43 }
 0x1d2   : > { %690 = vst [vmem:[%s1156_s10 + $0x180] sm:$0xff] %v596_v15 }
 0x1d3   : > { %691 = vst [vmem:[%s1156_s10 + $0x188] sm:$0xff] %v598_v17  ;;  %v601_v18 = vpop.f32.mrb[18].mxu1 }
 0x1d4   : > { %v602_v19 = vadd.f32 %v601_v18, %v1150_v42  ;;  %v603_v20 = vpop.f32.mrb[19].mxu1 }
 0x1d5   : > { %v604_v21 = vadd.f32 %v603_v20, %v1152_v43 }
 0x1d6   : > { %692 = vst [vmem:[%s1156_s10 + $0x190] sm:$0xff] %v602_v19 }
 0x1d7   : > { %693 = vst [vmem:[%s1156_s10 + $0x198] sm:$0xff] %v604_v21  ;;  %v607_v22 = vpop.f32.mrb[20].mxu1 }
 0x1d8   : > { %v608_v23 = vadd.f32 %v607_v22, %v1150_v42  ;;  %v609_v24 = vpop.f32.mrb[21].mxu1 }
 0x1d9   : > { %v610_v25 = vadd.f32 %v609_v24, %v1152_v43 }
 0x1da   : > { %694 = vst [vmem:[%s1156_s10 + $0x1a0] sm:$0xff] %v608_v23 }
 0x1db   : > { %695 = vst [vmem:[%s1156_s10 + $0x1a8] sm:$0xff] %v610_v25  ;;  %v613_v26 = vpop.f32.mrb[22].mxu1 }
 0x1dc   : > { %v614_v27 = vadd.f32 %v613_v26, %v1150_v42  ;;  %v615_v28 = vpop.f32.mrb[23].mxu1 }
 0x1dd   : > { %v616_v29 = vadd.f32 %v615_v28, %v1152_v43 }
 0x1de   : > { %696 = vst [vmem:[%s1156_s10 + $0x1b0] sm:$0xff] %v614_v27 }
 0x1df   : > { %697 = vst [vmem:[%s1156_s10 + $0x1b8] sm:$0xff] %v616_v29  ;;  %v619_v30 = vpop.f32.mrb[24].mxu1 }
 0x1e0   : > { %v620_v31 = vadd.f32 %v619_v30, %v1150_v42  ;;  %v621_v32 = vpop.f32.mrb[25].mxu1 }
 0x1e1   : > { %v622_v33 = vadd.f32 %v621_v32, %v1152_v43 }
 0x1e2   : > { %698 = vst [vmem:[%s1156_s10 + $0x1c0] sm:$0xff] %v620_v31 }
 0x1e3   : > { %699 = vst [vmem:[%s1156_s10 + $0x1c8] sm:$0xff] %v622_v33  ;;  %v625_v34 = vpop.f32.mrb[26].mxu1 }
 0x1e4   : > { %v626_v35 = vadd.f32 %v625_v34, %v1150_v42  ;;  %v627_v36 = vpop.f32.mrb[27].mxu1 }
 0x1e5   : > { %v628_v37 = vadd.f32 %v627_v36, %v1152_v43 }
 0x1e6   : > { %700 = vst [vmem:[%s1156_s10 + $0x1d0] sm:$0xff] %v626_v35 }
 0x1e7   : > { %701 = vst [vmem:[%s1156_s10 + $0x1d8] sm:$0xff] %v628_v37  ;;  %v631_v38 = vpop.f32.mrb[28].mxu1 }
 0x1e8   : > { %v632_v39 = vadd.f32 %v631_v38, %v1150_v42  ;;  %v633_v40 = vpop.f32.mrb[29].mxu1 }
 0x1e9   : > { %v634_v41 = vadd.f32 %v633_v40, %v1152_v43 }
 0x1ea   : > { %702 = vst [vmem:[%s1156_s10 + $0x1e0] sm:$0xff] %v632_v39 }
 0x1eb   : > { %703 = vst [vmem:[%s1156_s10 + $0x1e8] sm:$0xff] %v634_v41  ;;  %v637_v44 = vpop.f32.mrb[30].mxu1 }
 0x1ec   : > { %v638_v45 = vadd.f32 %v637_v44, %v1150_v42  ;;  %v639_v46 = vpop.f32.mrb[31].mxu1 }
 0x1ed   : > { %v640_v47 = vadd.f32 %v639_v46, %v1152_v43 }
 0x1ee   : > { %704 = vst [vmem:[%s1156_s10 + $0x1f0] sm:$0xff] %v638_v45 }
 0x1ef   : > { %705 = vst [vmem:[%s1156_s10 + $0x1f8] sm:$0xff] %v640_v47 }
 0x1f0   : > { %926 = shalt.err (!%p923_p5)
}
 0x1f1   : > { %s927_s30 = scalar_lea.hbm %s1286_s23, 8192  ;;  %s931_s6 = scalar_lea.hbm %s1344_s3, 16384 }
 0x1f2   : > { %p928_p6 = scmp.ne.s32.totalorder %s1286_s23, %s927_s30  ;;  %p932_p10 = scmp.lt.u32.totalorder %s1286_s23, %s1344_s3 }
 0x1f3   : > { %p933_p11 = scmp.lt.u32.totalorder %s931_s6, %s927_s30  ;;  %p935_p13 = scmp.lt.u32.totalorder %s927_s30, %s1286_s23 }
 0x1f4   : > { %p929_p7 = pnand %p928_p6, %p1057_p4 }
 0x1f5   : > { %p934_p12 = por %p933_p11, %p932_p10 }
 0x1f6   : > { %p930_p9 = pneg %p929_p7 }
 0x1f7   : > { %p936_p0 = por %p935_p13, %p934_p12 }
 0x1f9   : > { %p937_p1 = pnand %p936_p0, %p930_p9 }
 0x1fb   : > { %940 = shalt.err (!%p937_p1)
}
 0x1fc   : > { %s995_s9 = smov 256   ;;  %s996_s10 = smov 16  }
 0x1fd   : > { %853 = dma.vmem_to_hbm [thread:$0]  (%p1057_p4), %s1288_s18, 8192, %s1286_s23, %s1295_s15, %s995_s9, %s995_s9, %s996_s10  }
 0x1fe PF: > { %p859_p2 = scmp.ge.s32.totalorder %s991_s17, 2  ;;  %s738_s11 = sand.u32 1, %s971_s12  }
 0x1ff   : > { %s739_s19 = scalar_lea.sflag [#allocation3], %s738_s11 }
 0x200   : > { %p856_p3 = pnand %p859_p2, %p1064_p8 }
 0x202   : > { %966 = dma.done.wait (!%p856_p3), %s739_s19, 8192  }
 0x203   : > { %968 = vsyncadd (!%p856_p3), %s739_s19, 4294959104  ;;  %s16_s17 = sadd.s32 1, %s991_s17   ;;  %s1347_s12 = smov %s975_s13 }
 0x204   : > { %p13_p5 = scmp.ge.s32.totalorder %s16_s17, 4   ;;  %s1348_s13 = smov %s979_s14 }
 0x205   : > { %s1349_s14 = smov %s1070_s25  ;;  %s1350_s15 = smov %s987_s16 }
 0x206   : > { %s1351_s16 = smov %s1353_s20  ;;  %15 = sbr.rel (!%p13_p5) target bundleno = 4 (0x4), region = 67 }
 0x20d   :  { %744 = vsyncpa [#allocation3], 1 }
 0x20e   :  { %746 = vsyncpa [#allocation3 + $0x1], 1 }

</bundles_post_ra>
